<compile_context>
chip_gen: v7x
topology: tpu7x:2x2x1
jax: 0.10.0
libtpu: 0.0.40
codegen_flags: <defaults>
</compile_context>

<pallas_src>
import functools

import jax
import jax.numpy as jnp
from jax.experimental import pallas as pl
from jax.experimental.pallas import tpu as pltpu


def _round_up(n, m):
    return ((n + m - 1) // m) * m


def mlp_kernel(x_ref, w1_ref, b1_ref, w2_ref, b2_ref, w3_ref, b3_ref, o_ref):
    x = x_ref[...]
    # Layer 1: Linear (MXU, f32 accumulation) + bias + ReLU (f32 on VPU).
    h1 = jnp.dot(x, w1_ref[...], preferred_element_type=jnp.float32)
    h1 = jnp.maximum(h1 + b1_ref[...], 0.0)
    # Layer 2: Linear + bias + ReLU.
    h2 = jnp.dot(h1.astype(w2_ref.dtype), w2_ref[...],
                 preferred_element_type=jnp.float32)
    h2 = jnp.maximum(h2 + b2_ref[...], 0.0)
    # Layer 3: Linear + bias (no activation).
    out = jnp.dot(h2.astype(w3_ref.dtype), w3_ref[...],
                  preferred_element_type=jnp.float32)
    o_ref[...] = (out + b3_ref[...]).astype(o_ref.dtype)


@functools.partial(jax.jit, static_argnames=("block_b", "compute_dtype"))
def mlp_forward(x, w1, b1, w2, b2, w3, b3, *, block_b=256,
                compute_dtype=jnp.bfloat16):
    """Fused MLP forward.  x: (B, d_in); w_i: (in, out); b_i: (out,)."""
    B, d_in = x.shape
    h1_dim = w1.shape[1]
    h2_dim = w2.shape[1]
    d_out = w3.shape[1]

    LANE = 128  # pad all feature dims to lane multiples -> unmasked vregs/MXU
    d_in_p = _round_up(d_in, LANE)
    h1_p = _round_up(h1_dim, LANE)
    h2_p = _round_up(h2_dim, LANE)
    d_out_p = _round_up(d_out, LANE)

    # Batch tile: multiple of 8 sublanes, capped at block_b; pad B to a multiple.
    tb = min(block_b, _round_up(B, 8))
    b_p = _round_up(B, tb)

    def pad2(a, rows, cols):
        return jnp.pad(a, ((0, rows - a.shape[0]), (0, cols - a.shape[1])))

    x_p = pad2(x, b_p, d_in_p).astype(compute_dtype)
    w1_p = pad2(w1, d_in_p, h1_p).astype(compute_dtype)
    w2_p = pad2(w2, h1_p, h2_p).astype(compute_dtype)
    w3_p = pad2(w3, h2_p, d_out_p).astype(compute_dtype)
    b1_p = pad2(b1.reshape(1, -1).astype(jnp.float32), 1, h1_p)
    b2_p = pad2(b2.reshape(1, -1).astype(jnp.float32), 1, h2_p)
    b3_p = pad2(b3.reshape(1, -1).astype(jnp.float32), 1, d_out_p)

    grid = (b_p // tb,)
    # Weights/biases: same block every step -> DMA'd once, VMEM-resident.
    resident = lambda shape: pl.BlockSpec(shape, lambda i: (0, 0))

    flops = 2 * b_p * (d_in_p * h1_p + h1_p * h2_p + h2_p * d_out_p)
    bytes_accessed = (
        x_p.size * x_p.dtype.itemsize
        + sum(a.size * a.dtype.itemsize
              for a in (w1_p, b1_p, w2_p, b2_p, w3_p, b3_p))
        + b_p * d_out_p * 4)

    out_p = pl.pallas_call(
        mlp_kernel,
        out_shape=jax.ShapeDtypeStruct((b_p, d_out_p), jnp.float32),
        grid=grid,
        in_specs=[
            pl.BlockSpec((tb, d_in_p), lambda i: (i, 0)),   # x tile (pipelined)
            resident(w1_p.shape), resident(b1_p.shape),
            resident(w2_p.shape), resident(b2_p.shape),
            resident(w3_p.shape), resident(b3_p.shape),
        ],
        out_specs=pl.BlockSpec((tb, d_out_p), lambda i: (i, 0)),
        compiler_params=pltpu.CompilerParams(
            dimension_semantics=("parallel",),   # shard batch tiles across TCs
        ),
        cost_estimate=pl.CostEstimate(
            flops=flops, transcendentals=0, bytes_accessed=bytes_accessed),
    )(x_p, w1_p, b1_p, w2_p, b2_p, w3_p, b3_p)

    return out_p[:B, :d_out]


def init_linear(key, fan_in, fan_out):
    # Mimic PyTorch nn.Linear default init: U(-1/sqrt(fan_in), 1/sqrt(fan_in)).
    kw, kb = jax.random.split(key)
    bound = 1.0 / jnp.sqrt(jnp.float32(fan_in))
    # Stored as (fan_in, fan_out) = PyTorch weight transposed.
    w = jax.random.uniform(kw, (fan_in, fan_out), jnp.float32, -bound, bound)
    b = jax.random.uniform(kb, (fan_out,), jnp.float32, -bound, bound)
    return w, b


if __name__ == "__main__":
    # Shapes consistent with the module: MLP(input_dim=16, output_dim=8) with
    # the default hidden_dim=256.  batch=256 gives a 2-step pipelined grid.
    batch, input_dim, hidden_dim, output_dim = 256, 16, 256, 8

    key = jax.random.PRNGKey(0)
    kx, k1, k2, k3 = jax.random.split(key, 4)

    x = jax.random.normal(kx, (batch, input_dim), jnp.float32)
    w1, b1 = init_linear(k1, input_dim, hidden_dim)
    w2, b2 = init_linear(k2, hidden_dim, hidden_dim)
    w3, b3 = init_linear(k3, hidden_dim, output_dim)

    out = mlp_forward(x, w1, b1, w2, b2, w3, b3, block_b=128)
    out = jax.block_until_ready(out)
    assert out.shape == (batch, output_dim)

    # Reference 1: same bf16-operand / f32-accumulate recipe in pure JAX.
    cd = jnp.bfloat16
    h = jnp.maximum(jnp.dot(x.astype(cd), w1.astype(cd),
                            preferred_element_type=jnp.float32) + b1[None, :], 0.0)
    h = jnp.maximum(jnp.dot(h.astype(cd), w2.astype(cd),
                            preferred_element_type=jnp.float32) + b2[None, :], 0.0)
    ref_bf16 = jnp.dot(h.astype(cd), w3.astype(cd),
                       preferred_element_type=jnp.float32) + b3[None, :]
    assert jnp.allclose(out, ref_bf16, atol=2e-2, rtol=2e-2)

    # Reference 2: full-f32 PyTorch-equivalent forward (loose tol, bf16 operands).
    hf = jnp.maximum(x @ w1 + b1[None, :], 0.0)
    hf = jnp.maximum(hf @ w2 + b2[None, :], 0.0)
    ref_f32 = hf @ w3 + b3[None, :]
    assert jnp.allclose(out, ref_f32, atol=5e-2, rtol=5e-2)

    print("KERNEL_OK")
</pallas_src>

<mosaic_0001>
module attributes {stable_mosaic.version = 11 : i64} {
  func.func @mlp_kernel(%arg0: i32, %arg1: memref<128x128xbf16, #tpu.memory_space<vmem>>, %arg2: memref<128x256xbf16, #tpu.memory_space<vmem>>, %arg3: memref<1x256xf32, #tpu.memory_space<vmem>>, %arg4: memref<256x256xbf16, #tpu.memory_space<vmem>>, %arg5: memref<1x256xf32, #tpu.memory_space<vmem>>, %arg6: memref<256x128xbf16, #tpu.memory_space<vmem>>, %arg7: memref<1x128xf32, #tpu.memory_space<vmem>>, %arg8: memref<128x128xf32, #tpu.memory_space<vmem>>) attributes {dimension_semantics = [#tpu.dimension_semantics<parallel>], iteration_bounds = array<i64: 2>, scalar_prefetch = 0 : i64, scratch_operands = 0 : i64, tpu.core_type = #tpu.core_type<tc>, window_params = [{transform_indices = @transform_0, window_bounds = array<i64: 128, 128>}, {pipeline_mode = #tpu.pipeline_mode<synchronous>, transform_indices = @transform_1, window_bounds = array<i64: 128, 256>}, {pipeline_mode = #tpu.pipeline_mode<synchronous>, transform_indices = @transform_2, window_bounds = array<i64: 1, 256>}, {pipeline_mode = #tpu.pipeline_mode<synchronous>, transform_indices = @transform_3, window_bounds = array<i64: 256, 256>}, {pipeline_mode = #tpu.pipeline_mode<synchronous>, transform_indices = @transform_4, window_bounds = array<i64: 1, 256>}, {pipeline_mode = #tpu.pipeline_mode<synchronous>, transform_indices = @transform_5, window_bounds = array<i64: 256, 128>}, {pipeline_mode = #tpu.pipeline_mode<synchronous>, transform_indices = @transform_6, window_bounds = array<i64: 1, 128>}, {transform_indices = @transform_7, window_bounds = array<i64: 128, 128>}]} {
    %c0 = arith.constant 0 : index
    %c0_0 = arith.constant 0 : index
    %0 = vector.load %arg1[%c0, %c0_0] : memref<128x128xbf16, #tpu.memory_space<vmem>>, vector<128x128xbf16>
    %c0_1 = arith.constant 0 : index
    %c0_2 = arith.constant 0 : index
    %1 = vector.load %arg2[%c0_1, %c0_2] : memref<128x256xbf16, #tpu.memory_space<vmem>>, vector<128x256xbf16>
    %cst = arith.constant dense<0.000000e+00> : vector<128x256xf32>
    %2 = tpu.matmul %0, %1, %cst {dimension_numbers = #tpu.dot_dimension_numbers<[1], [0], [0], [1], [0, 0, 1, 1], [], []>} : vector<128x128xbf16>, vector<128x256xbf16>, vector<128x256xf32> -> vector<128x256xf32>
    %c0_3 = arith.constant 0 : index
    %c0_4 = arith.constant 0 : index
    %3 = vector.load %arg3[%c0_3, %c0_4] : memref<1x256xf32, #tpu.memory_space<vmem>>, vector<1x256xf32>
    %4 = vector.broadcast %3 : vector<1x256xf32> to vector<128x256xf32>
    %5 = arith.addf %2, %4 : vector<128x256xf32>
    %cst_5 = arith.constant 0.000000e+00 : f32
    %6 = vector.broadcast %cst_5 : f32 to vector<128x256xf32>
    %7 = arith.maximumf %5, %6 : vector<128x256xf32>
    %8 = arith.truncf %7 : vector<128x256xf32> to vector<128x256xbf16>
    %c0_6 = arith.constant 0 : index
    %c0_7 = arith.constant 0 : index
    %9 = vector.load %arg4[%c0_6, %c0_7] : memref<256x256xbf16, #tpu.memory_space<vmem>>, vector<256x256xbf16>
    %cst_8 = arith.constant dense<0.000000e+00> : vector<128x256xf32>
    %10 = tpu.matmul %8, %9, %cst_8 {dimension_numbers = #tpu.dot_dimension_numbers<[1], [0], [0], [1], [0, 0, 1, 1], [], []>} : vector<128x256xbf16>, vector<256x256xbf16>, vector<128x256xf32> -> vector<128x256xf32>
    %c0_9 = arith.constant 0 : index
    %c0_10 = arith.constant 0 : index
    %11 = vector.load %arg5[%c0_9, %c0_10] : memref<1x256xf32, #tpu.memory_space<vmem>>, vector<1x256xf32>
    %12 = vector.broadcast %11 : vector<1x256xf32> to vector<128x256xf32>
    %13 = arith.addf %10, %12 : vector<128x256xf32>
    %cst_11 = arith.constant 0.000000e+00 : f32
    %14 = vector.broadcast %cst_11 : f32 to vector<128x256xf32>
    %15 = arith.maximumf %13, %14 : vector<128x256xf32>
    %16 = arith.truncf %15 : vector<128x256xf32> to vector<128x256xbf16>
    %c0_12 = arith.constant 0 : index
    %c0_13 = arith.constant 0 : index
    %17 = vector.load %arg6[%c0_12, %c0_13] : memref<256x128xbf16, #tpu.memory_space<vmem>>, vector<256x128xbf16>
    %cst_14 = arith.constant dense<0.000000e+00> : vector<128x128xf32>
    %18 = tpu.matmul %16, %17, %cst_14 {dimension_numbers = #tpu.dot_dimension_numbers<[1], [0], [0], [1], [0, 0, 1, 1], [], []>} : vector<128x256xbf16>, vector<256x128xbf16>, vector<128x128xf32> -> vector<128x128xf32>
    %c0_15 = arith.constant 0 : index
    %c0_16 = arith.constant 0 : index
    %19 = vector.load %arg7[%c0_15, %c0_16] : memref<1x128xf32, #tpu.memory_space<vmem>>, vector<1x128xf32>
    %20 = vector.broadcast %19 : vector<1x128xf32> to vector<128x128xf32>
    %21 = arith.addf %18, %20 : vector<128x128xf32>
    %c0_17 = arith.constant 0 : index
    %c0_18 = arith.constant 0 : index
    %22 = vector.load %arg8[%c0_17, %c0_18] : memref<128x128xf32, #tpu.memory_space<vmem>>, vector<128x128xf32>
    tpu.vector_store %arg8[%c0_17, %c0_18], %21 {strides = array<i32>} : memref<128x128xf32, #tpu.memory_space<vmem>>, vector<128x128xf32>,
    return
  }
  func.func @transform_0(%arg0: i32) -> (i32, i32) {
    %c0_i32 = arith.constant 0 : i32
    %c0_i32_0 = arith.constant 0 : i32
    return %arg0, %c0_i32 : i32, i32
  }
  func.func @transform_1(%arg0: i32) -> (i32, i32) {
    %c0_i32 = arith.constant 0 : i32
    %c0_i32_0 = arith.constant 0 : i32
    %c0_i32_1 = arith.constant 0 : i32
    return %c0_i32, %c0_i32_0 : i32, i32
  }
  func.func @transform_2(%arg0: i32) -> (i32, i32) {
    %c0_i32 = arith.constant 0 : i32
    %c0_i32_0 = arith.constant 0 : i32
    %c0_i32_1 = arith.constant 0 : i32
    return %c0_i32, %c0_i32_0 : i32, i32
  }
  func.func @transform_3(%arg0: i32) -> (i32, i32) {
    %c0_i32 = arith.constant 0 : i32
    %c0_i32_0 = arith.constant 0 : i32
    %c0_i32_1 = arith.constant 0 : i32
    return %c0_i32, %c0_i32_0 : i32, i32
  }
  func.func @transform_4(%arg0: i32) -> (i32, i32) {
    %c0_i32 = arith.constant 0 : i32
    %c0_i32_0 = arith.constant 0 : i32
    %c0_i32_1 = arith.constant 0 : i32
    return %c0_i32, %c0_i32_0 : i32, i32
  }
  func.func @transform_5(%arg0: i32) -> (i32, i32) {
    %c0_i32 = arith.constant 0 : i32
    %c0_i32_0 = arith.constant 0 : i32
    %c0_i32_1 = arith.constant 0 : i32
    return %c0_i32, %c0_i32_0 : i32, i32
  }
  func.func @transform_6(%arg0: i32) -> (i32, i32) {
    %c0_i32 = arith.constant 0 : i32
    %c0_i32_0 = arith.constant 0 : i32
    %c0_i32_1 = arith.constant 0 : i32
    return %c0_i32, %c0_i32_0 : i32, i32
  }
  func.func @transform_7(%arg0: i32) -> (i32, i32) {
    %c0_i32 = arith.constant 0 : i32
    %c0_i32_0 = arith.constant 0 : i32
    return %arg0, %c0_i32 : i32, i32
  }
}

</mosaic_0001>

<bundles_post_ra>
// kernel: mlp_forward.1
= control target key start
LH: loop header
LB: loop body
LE: loop exit
PB: predicated region body
PF: predicated region fallthrough
CT: control target
= control target key end

     0   :  { %s1603_s24 = smov 0   ;;  %s1987_s0 = inlined_call_operand.vmem [shape: bf16[256,128], index: 0, kind: input, shape index: {}]   ;;  %s1988_s1 = inlined_call_operand.vmem [shape: bf16[128,256], index: 1, kind: input, shape index: {}]   ;;  %s1989_s2 = inlined_call_operand.vmem [shape: f32[1,256], index: 2, kind: input, shape index: {}]   ;;  %s1990_s3 = inlined_call_operand.vmem [shape: bf16[256,256], index: 3, kind: input, shape index: {}]   ;;  %s1991_s4 = inlined_call_operand.vmem [shape: f32[1,256], index: 4, kind: input, shape index: {}]   ;;  %s1992_s5 = inlined_call_operand.vmem [shape: bf16[256,128], index: 5, kind: input, shape index: {}]   ;;  %s1993_s6 = inlined_call_operand.vmem [shape: f32[1,128], index: 6, kind: input, shape index: {}]   ;;  %s1994_s7 = inlined_call_operand.vmem [shape: f32[256,128], index: 7, kind: output, shape index: {}]  }
   0x1 LB: > { %s1285_s25 = sadd.s32 4294967295, %s1560_s24   ;;  %p1289_p0 = scmp.ge.s32.totalorder %s1560_s24, 1  ;;  %s1560_s24 = sphi %s1603_s24, %s17_s24  }
   0x2   : > { %p238_p1 = scmp.lt.s32.totalorder %s1560_s24, 3 }
   0x4   : > { %p239_p2 = pnand %p1289_p0, %p238_p1 }
   0x5   : > { %v1458_v0 = vld [vmem:[%s1988_s1 + $0x4] ss:$8 sps:$4 sm:$0xff] (!%p239_p2)   ;;  %s1290_s28 = sshll.u32 (!%p239_p2), %s1285_s25, 4  ;;  %v1460_v1 = vld [vmem:[%s1988_s1] ss:$8 sps:$4 sm:$0xff] (!%p239_p2)   ;;  %v1562_v2 = vmov (!%p239_p2), 0  }
   0x6   : > { %242 = sbr.rel (%p239_p2) target bundleno = 758 (0x2f6), region = 48  ;;  %487 = vmatprep.mubr.bf16.mxu0 (!%p239_p2), %v1562_v2  ;;  %p271_p3 = scmp.lt.s32.totalorder (!%p239_p2), %s1290_s28, 31  ;;  %455 = vmatprep.subr.bf16.mxu0 (!%p239_p2), %v1458_v0  ;;  %v1461_v3 = vld [vmem:[%s1988_s1 + $0x14] ss:$8 sps:$4 sm:$0xff] (!%p239_p2)   ;;  %v1463_v4 = vld [vmem:[%s1988_s1 + $0x10] ss:$8 sps:$4 sm:$0xff] (!%p239_p2)  }
   0x7   : > { %456 = vmatpush1.bf16.msra.mxu0 (!%p239_p2), %v1460_v1  ;;  %v1464_v5 = vld [vmem:[%s1988_s1 + $0x24] ss:$8 sps:$4 sm:$0xff] (!%p239_p2)   ;;  %v1466_v6 = vld [vmem:[%s1988_s1 + $0x20] ss:$8 sps:$4 sm:$0xff] (!%p239_p2)   ;;  %v1467_v7 = vld [vmem:[%s1988_s1 + $0x34] ss:$8 sps:$4 sm:$0xff] (!%p239_p2)  }
   0x8   : > { %457 = vmatprep.subr.bf16.mxu0 (!%p239_p2), %v1461_v3  ;;  %v1469_v8 = vld [vmem:[%s1988_s1 + $0x30] ss:$8 sps:$4 sm:$0xff] (!%p239_p2)   ;;  %v1470_v9 = vld [vmem:[%s1988_s1 + $0x44] ss:$8 sps:$4 sm:$0xff] (!%p239_p2)   ;;  %v1472_v10 = vld [vmem:[%s1988_s1 + $0x40] ss:$8 sps:$4 sm:$0xff] (!%p239_p2)  }
   0x9   : > { %v1473_v11 = vld [vmem:[%s1988_s1 + $0x54] ss:$8 sps:$4 sm:$0xff] (!%p239_p2)   ;;  %v1475_v12 = vld [vmem:[%s1988_s1 + $0x50] ss:$8 sps:$4 sm:$0xff] (!%p239_p2)   ;;  %v1476_v13 = vld [vmem:[%s1988_s1 + $0x64] ss:$8 sps:$4 sm:$0xff] (!%p239_p2)  }
   0xa   : > { %v1490_v14 = vld [vmem:[%s1990_s3 + $0x4] ss:$8 sps:$4 sm:$0xff] (!%p239_p2)   ;;  %v1492_v15 = vld [vmem:[%s1990_s3] ss:$8 sps:$4 sm:$0xff] (!%p239_p2)   ;;  %v1493_v16 = vld [vmem:[%s1990_s3 + $0x14] ss:$8 sps:$4 sm:$0xff] (!%p239_p2)  }
   0xb   : > { %458 = vmatpush1.bf16.msra.mxu0 (!%p239_p2), %v1463_v4  ;;  %820 = vmatprep.subr.bf16.mxu1 (!%p239_p2), %v1490_v14  ;;  %v1495_v17 = vld [vmem:[%s1990_s3 + $0x10] ss:$8 sps:$4 sm:$0xff] (!%p239_p2)   ;;  %v1478_v18 = vld [vmem:[%s1988_s1 + $0x60] ss:$8 sps:$4 sm:$0xff] (!%p239_p2)   ;;  %v1496_v19 = vld [vmem:[%s1990_s3 + $0x24] ss:$8 sps:$4 sm:$0xff] (!%p239_p2)   ;;  %v317_v4 = vlaneseq (!%p239_p2) }
   0xc   : > { %459 = vmatprep.subr.bf16.mxu0 (!%p239_p2), %v1464_v5  ;;  %821 = vmatpush1.bf16.msra.mxu1 (!%p239_p2), %v1492_v15  ;;  %v1479_v20 = vld [vmem:[%s1988_s1 + $0x74] ss:$8 sps:$4 sm:$0xff] (!%p239_p2)   ;;  %v1498_v21 = vld [vmem:[%s1990_s3 + $0x20] ss:$8 sps:$4 sm:$0xff] (!%p239_p2)   ;;  %v1481_v22 = vld [vmem:[%s1988_s1 + $0x70] ss:$8 sps:$4 sm:$0xff] (!%p239_p2)  }
   0xd   : > { %s1996_s28 = smov (!%p271_p3, %s1290_s28), 31  ;;  %822 = vmatprep.subr.bf16.mxu1 %v1493_v16  ;;  %v1499_v23 = vld [vmem:[%s1990_s3 + $0x34] ss:$8 sps:$4 sm:$0xff]   ;;  %v1501_v25 = vld [vmem:[%s1990_s3 + $0x30] ss:$8 sps:$4 sm:$0xff]   ;;  %v1538_v57 = vld [vmem:[%s1992_s5 + $0x40] sm:$0xff]  }
   0xe   : > { %s1291_s14 = sshll.u32 %s1996_s28, 2  ;;  %v1502_v26 = vld [vmem:[%s1990_s3 + $0x44] ss:$8 sps:$4 sm:$0xff]   ;;  %v1504_v27 = vld [vmem:[%s1990_s3 + $0x40] ss:$8 sps:$4 sm:$0xff]   ;;  %v1542_v61 = vld [vmem:[%s1992_s5 + $0x50] sm:$0xff]  }
   0xf   : > { %s1639_s21 = scalar_lea.vmem %s1987_s0, %s1291_s14  ;;  %460 = vmatpush1.bf16.msra.mxu0 %v1466_v6  ;;  %v1505_v28 = vld [vmem:[%s1990_s3 + $0x54] ss:$8 sps:$4 sm:$0xff]   ;;  %v1507_v30 = vld [vmem:[%s1990_s3 + $0x50] ss:$8 sps:$4 sm:$0xff]   ;;  %v1508_v31 = vld [vmem:[%s1990_s3 + $0x64] ss:$8 sps:$4 sm:$0xff]  }
  0x10   : > { %461 = vmatprep.subr.bf16.mxu0 %v1467_v7  ;;  %823 = vmatpush1.bf16.msra.mxu1 %v1495_v17  ;;  %v1482_v24 = vld [vmem:[%s1639_s21] sm:$0xff]   ;;  %v1483_v29 = vld [vmem:[%s1639_s21 + $0x8] sm:$0xff]   ;;  %v1511_v33 = vld [vmem:[%s1990_s3 + $0x74] ss:$8 sps:$4 sm:$0xff]   ;;  %v1830_v5 = vshrl.u32 %v317_v4, 7  ;;  %s1293_s17 = sshll.u32 %s1996_s28, 3 }
  0x11   : > { %824 = vmatprep.subr.bf16.mxu1 %v1496_v19  ;;  %v1510_v32 = vld [vmem:[%s1990_s3 + $0x60] ss:$8 sps:$4 sm:$0xff]   ;;  %v1484_v34 = vld [vmem:[%s1639_s21 + $0x10] sm:$0xff]   ;;  %v1514_v36 = vld [vmem:[%s1990_s3 + $0x84] ss:$8 sps:$4 sm:$0xff]   ;;  %s1950_s22 = scalar_lea.vmem %s1994_s7, %s1293_s17 }
  0x12   : > { %v1513_v35 = vld [vmem:[%s1990_s3 + $0x70] ss:$8 sps:$4 sm:$0xff]   ;;  %v1516_v37 = vld [vmem:[%s1990_s3 + $0x80] ss:$8 sps:$4 sm:$0xff]   ;;  %v1517_v38 = vld [vmem:[%s1990_s3 + $0x94] ss:$8 sps:$4 sm:$0xff]  }
  0x13   : > { %462 = vmatpush1.bf16.msra.mxu0 %v1469_v8  ;;  %v1485_v39 = vld [vmem:[%s1639_s21 + $0x18] sm:$0xff]   ;;  %v1520_v41 = vld [vmem:[%s1990_s3 + $0xa4] ss:$8 sps:$4 sm:$0xff]   ;;  %v1522_v42 = vld [vmem:[%s1990_s3 + $0xa0] ss:$8 sps:$4 sm:$0xff]   ;;  %v319_v6 = vsub.s32 0, %v1830_v5 }
  0x14   : > { %463 = vmatprep.subr.bf16.mxu0 %v1470_v9  ;;  %825 = vmatpush1.bf16.msra.mxu1 %v1498_v21  ;;  %v1519_v40 = vld [vmem:[%s1990_s3 + $0x90] ss:$8 sps:$4 sm:$0xff]   ;;  %v1523_v43 = vld [vmem:[%s1990_s3 + $0xb4] ss:$8 sps:$4 sm:$0xff]   ;;  %v1486_v44 = vld [vmem:[%s1639_s21 + $0x20] sm:$0xff]   ;;  %v323_v8 = vsub.s32 1, %v1830_v5 }
  0x15   : > { %826 = vmatprep.subr.bf16.mxu1 %v1499_v23  ;;  %v1525_v45 = vld [vmem:[%s1990_s3 + $0xb0] ss:$8 sps:$4 sm:$0xff]   ;;  %v1526_v46 = vld [vmem:[%s1990_s3 + $0xc4] ss:$8 sps:$4 sm:$0xff]   ;;  %v1528_v47 = vld [vmem:[%s1990_s3 + $0xc0] ss:$8 sps:$4 sm:$0xff]  }
  0x16   : > { %v1529_v48 = vld [vmem:[%s1990_s3 + $0xd4] ss:$8 sps:$4 sm:$0xff]   ;;  %v1487_v49 = vld [vmem:[%s1639_s21 + $0x28] sm:$0xff]   ;;  %v1531_v52 = vld [vmem:[%s1990_s3 + $0xd0] ss:$8 sps:$4 sm:$0xff]  }
  0x17   : > { %464 = vmatpush1.bf16.msra.mxu0 %v1472_v10  ;;  %v1488_v50 = vld [vmem:[%s1639_s21 + $0x30] sm:$0xff]   ;;  %v1489_v51 = vld [vmem:[%s1639_s21 + $0x38] sm:$0xff]   ;;  %v1532_v53 = vld [vmem:[%s1990_s3 + $0xe4] ss:$8 sps:$4 sm:$0xff]  }
  0x18   : > { %465 = vmatprep.subr.bf16.mxu0 %v1473_v11  ;;  %827 = vmatpush1.bf16.msra.mxu1 %v1501_v25  ;;  %v1534_v54 = vld [vmem:[%s1990_s3 + $0xe0] ss:$8 sps:$4 sm:$0xff]   ;;  %v1535_v55 = vld [vmem:[%s1990_s3 + $0xf4] ss:$8 sps:$4 sm:$0xff]   ;;  %v1537_v56 = vld [vmem:[%s1990_s3 + $0xf0] ss:$8 sps:$4 sm:$0xff]  }
  0x19   : > { %828 = vmatprep.subr.bf16.mxu1 %v1502_v26  ;;  %v1539_v58 = vld [vmem:[%s1992_s5] sm:$0xff]   ;;  %v1540_v59 = vld [vmem:[%s1992_s5 + $0x48] sm:$0xff]   ;;  %v1797_v62 = vld [vmem:[%s1992_s5 + $0x10] sm:$0xff]  }
  0x1a   : > { %v1541_v60 = vld [vmem:[%s1992_s5 + $0x8] sm:$0xff]   ;;  %v1802_v63 = vld [vmem:[%s1992_s5 + $0x58] sm:$0xff]   ;;  %v1814_v1 = vld [vmem:[%s1992_s5 + $0x60] sm:$0xff]  }
  0x1b   : > { %466 = vmatpush1.bf16.msra.mxu0 %v1475_v12  ;;  %v1808_v0 = vld [vmem:[%s1992_s5 + $0x18] sm:$0xff]   ;;  %v1826_v3 = vld [vmem:[%s1992_s5 + $0x68] sm:$0xff]   ;;  %v315_v7 = vld [vmem:[%s1989_s2] sm:$0x3] }
  0x1c   : > { %467 = vmatprep.subr.bf16.mxu0 %v1476_v13  ;;  %829 = vmatpush1.bf16.msra.mxu1 %v1504_v27  ;;  %v1839_v9 = vrot.slane %v315_v7, %v319_v6  ;;  %v1843_v10 = vrot.slane %v315_v7, %v323_v8 }
  0x1d   : > { %830 = vmatprep.subr.bf16.mxu1 %v1505_v28 }
  0x1f   : > { %468 = vmatpush1.bf16.msra.mxu0 %v1478_v18 }
  0x20   : > { %469 = vmatprep.subr.bf16.mxu0 %v1479_v20  ;;  %831 = vmatpush1.bf16.msra.mxu1 %v1507_v30 }
  0x21   : > { %832 = vmatprep.subr.bf16.mxu1 %v1508_v31 }
  0x23   : > { %470 = vmatpush1.bf16.msra.mxu0 %v1481_v22 }
  0x24   : > { %833 = vmatpush1.bf16.msra.mxu1 %v1510_v32  ;;  %1369 = vmatprep.subr.bf16.mxu0 %v1538_v57 }
  0x25   : > { %834 = vmatprep.subr.bf16.mxu1 %v1511_v33 }
  0x26   : > { %488 = vmatmul.mubr.bf16.vlgmr.msra.gmra.mrb[0].mxu0 %v1482_v24 }
  0x27   : > { %497 = vmatprep.mubr.bf16.mxu0 %v1562_v2  ;;  %1370 = vmatpush3.bf16.msra.mxu0 %v1539_v58 }
  0x28   : > { %835 = vmatpush1.bf16.msra.mxu1 %v1513_v35  ;;  %1371 = vmatprep.subr.bf16.mxu0 %v1540_v59 }
  0x29   : > { %836 = vmatprep.subr.bf16.mxu1 %v1514_v36 }
  0x2b   : > { %1372 = vmatpush3.bf16.msra.mxu0 %v1541_v60 }
  0x2c   : > { %837 = vmatpush1.bf16.msra.mxu1 %v1516_v37  ;;  %1373 = vmatprep.subr.bf16.mxu0 %v1542_v61 }
  0x2d   : > { %838 = vmatprep.subr.bf16.mxu1 %v1517_v38 }
  0x2e   : > { %498 = vmatmul.mubr.bf16.gmra.mrb[4].mxu0 %v1483_v29 }
  0x2f   : > { %507 = vmatprep.mubr.bf16.mxu0 %v1562_v2  ;;  %1374 = vmatpush3.bf16.msra.mxu0 %v1797_v62 }
  0x30   : > { %839 = vmatpush1.bf16.msra.mxu1 %v1519_v40  ;;  %1375 = vmatprep.subr.bf16.mxu0 %v1802_v63 }
  0x31   : > { %840 = vmatprep.subr.bf16.mxu1 %v1520_v41 }
  0x33   : > { %1376 = vmatpush3.bf16.msra.mxu0 %v1808_v0 }
  0x34   : > { %841 = vmatpush1.bf16.msra.mxu1 %v1522_v42  ;;  %1377 = vmatprep.subr.bf16.mxu0 %v1814_v1 }
  0x35   : > { %842 = vmatprep.subr.bf16.mxu1 %v1523_v43 }
  0x36   : > { %508 = vmatmul.mubr.bf16.gmra.mrb[8].mxu0 %v1484_v34 }
  0x37   : > { %517 = vmatprep.mubr.bf16.mxu0 %v1562_v2 }
  0x38   : > { %843 = vmatpush1.bf16.msra.mxu1 %v1525_v45 }
  0x39   : > { %844 = vmatprep.subr.bf16.mxu1 %v1526_v46 }
  0x3c   : > { %845 = vmatpush1.bf16.msra.mxu1 %v1528_v47 }
  0x3d   : > { %846 = vmatprep.subr.bf16.mxu1 %v1529_v48 }
  0x3e   : > { %518 = vmatmul.mubr.bf16.gmra.mrb[12].mxu0 %v1485_v39 }
  0x3f   : > { %527 = vmatprep.mubr.bf16.mxu0 %v1562_v2 }
  0x40   : > { %847 = vmatpush1.bf16.msra.mxu1 %v1531_v52 }
  0x41   : > { %848 = vmatprep.subr.bf16.mxu1 %v1532_v53 }
  0x44   : > { %849 = vmatpush1.bf16.msra.mxu1 %v1534_v54 }
  0x45   : > { %850 = vmatprep.subr.bf16.mxu1 %v1535_v55 }
  0x46   : > { %528 = vmatmul.mubr.bf16.gmra.mrb[16].mxu0 %v1486_v44 }
  0x47   : > { %537 = vmatprep.mubr.bf16.mxu0 %v1562_v2 }
  0x48   : > { %851 = vmatpush1.bf16.msra.mxu1 %v1537_v56 }
  0x49   : > { %1433 = vmatprep.subr.bf16.mxu1 %v1538_v57 }
  0x4e   : > { %538 = vmatmul.mubr.bf16.gmra.mrb[20].mxu0 %v1487_v49 }
  0x4f   : > { %547 = vmatprep.mubr.bf16.mxu0 %v1562_v2 }
  0x56   : > { %548 = vmatmul.mubr.bf16.gmra.mrb[24].mxu0 %v1488_v50 }
  0x57   : > { %557 = vmatprep.mubr.bf16.mxu0 %v1562_v2  ;;  %v1820_v2 = vld [vmem:[%s1992_s5 + $0x20] sm:$0xff]  }
  0x58   : > { %1378 = vmatpush3.bf16.msra.mxu0 %v1820_v2 }
  0x59   : > { %1379 = vmatprep.subr.bf16.mxu0 %v1826_v3 }
  0x5e   : > { %558 = vmatmul.mubr.bf16.gmra.mrb[28].mxu0 %v1489_v51 }
  0xf9   : > { %v489_v11 = vpop.f32.mrb[0].mxu0 }
  0xfa   : > { %v490_v12 = vadd.f32 %v489_v11, %v1839_v9  ;;  %v491_v13 = vpop.f32.mrb[1].mxu0 }
  0xfb   : > { %v492_v14 = vadd.f32 %v491_v13, %v1843_v10  ;;  %v493_v15 = vpop.f32.mrb[2].mxu0 }
  0xfc   : > { %v494_v16 = vadd.f32 %v493_v15, %v1839_v9  ;;  %v495_v17 = vpop.f32.mrb[3].mxu0  ;;  %v568_v19 = vmax.f32 %v490_v12, 0.0 }
  0xfd   : > { %v496_v18 = vadd.f32 %v495_v17, %v1843_v10  ;;  %v569_v21 = vmax.f32 %v492_v14, 0.0 }
  0xfe   : > { %v570_v20 = vmax.f32 %v494_v16, 0.0 }
  0xff   : > { %v571_v22 = vmax.f32 %v496_v18, 0.0 }
 0x100   : > { %v600_v23 = vpack.c.bf16 %v570_v20, %v568_v19 }
 0x101   : > { %v499_v24 = vpop.f32.mrb[4].mxu0  ;;  %v601_v25 = vpack.c.bf16 %v571_v22, %v569_v21 }
 0x102   : > { %v500_v26 = vadd.f32 %v499_v24, %v1839_v9  ;;  %v501_v27 = vpop.f32.mrb[5].mxu0 }
 0x103   : > { %v502_v28 = vadd.f32 %v501_v27, %v1843_v10  ;;  %v503_v29 = vpop.f32.mrb[6].mxu0  ;;  %852 = vmatprep.mubr.bf16.mxu1 %v601_v25 }
 0x104   : > { %v504_v30 = vadd.f32 %v503_v29, %v1839_v9  ;;  %v505_v31 = vpop.f32.mrb[7].mxu0  ;;  %853 = vmatmul.mubr.bf16.vlgmr.msra.gmra.mrb[0].mxu1 %v600_v23  ;;  %v572_v33 = vmax.f32 %v500_v26, 0.0 }
 0x105   : > { %v506_v32 = vadd.f32 %v505_v31, %v1843_v10  ;;  %1441 = vmatpush3.bf16.msra.mxu1 %v1539_v58  ;;  %v573_v35 = vmax.f32 %v502_v28, 0.0 }
 0x106   : > { %v574_v34 = vmax.f32 %v504_v30, 0.0  ;;  %1434 = vmatprep.subr.bf16.mxu1 %v1540_v59 }
 0x107   : > { %v575_v36 = vmax.f32 %v506_v32, 0.0 }
 0x108   : > { %v602_v37 = vpack.c.bf16 %v574_v34, %v572_v33 }
 0x109   : > { %v603_v38 = vpack.c.bf16 %v575_v36, %v573_v35  ;;  %v509_v39 = vpop.f32.mrb[8].mxu0  ;;  %1442 = vmatpush3.bf16.msra.mxu1 %v1541_v60 }
 0x10a   : > { %v510_v40 = vadd.f32 %v509_v39, %v1839_v9  ;;  %v511_v41 = vpop.f32.mrb[9].mxu0  ;;  %1435 = vmatprep.subr.bf16.mxu1 %v1542_v61 }
 0x10b   : > { %v512_v42 = vadd.f32 %v511_v41, %v1843_v10  ;;  %v513_v43 = vpop.f32.mrb[10].mxu0  ;;  %862 = vmatprep.mubr.bf16.mxu1 %v603_v38 }
 0x10c   : > { %v514_v44 = vadd.f32 %v513_v43, %v1839_v9  ;;  %v515_v45 = vpop.f32.mrb[11].mxu0  ;;  %863 = vmatmul.mubr.bf16.gmra.mrb[4].mxu1 %v602_v37  ;;  %v576_v47 = vmax.f32 %v510_v40, 0.0 }
 0x10d   : > { %v516_v46 = vadd.f32 %v515_v45, %v1843_v10  ;;  %1443 = vmatpush3.bf16.msra.mxu1 %v1797_v62  ;;  %v577_v49 = vmax.f32 %v512_v42, 0.0 }
 0x10e   : > { %v578_v48 = vmax.f32 %v514_v44, 0.0  ;;  %1436 = vmatprep.subr.bf16.mxu1 %v1802_v63 }
 0x10f   : > { %v579_v50 = vmax.f32 %v516_v46, 0.0 }
 0x110   : > { %v604_v51 = vpack.c.bf16 %v578_v48, %v576_v47 }
 0x111   : > { %v605_v52 = vpack.c.bf16 %v579_v50, %v577_v49  ;;  %v519_v53 = vpop.f32.mrb[12].mxu0  ;;  %1444 = vmatpush3.bf16.msra.mxu1 %v1808_v0 }
 0x112   : > { %v520_v54 = vadd.f32 %v519_v53, %v1839_v9  ;;  %v521_v55 = vpop.f32.mrb[13].mxu0  ;;  %1437 = vmatprep.subr.bf16.mxu1 %v1814_v1 }
 0x113   : > { %v522_v56 = vadd.f32 %v521_v55, %v1843_v10  ;;  %v523_v57 = vpop.f32.mrb[14].mxu0  ;;  %872 = vmatprep.mubr.bf16.mxu1 %v605_v52 }
 0x114   : > { %v524_v58 = vadd.f32 %v523_v57, %v1839_v9  ;;  %v525_v59 = vpop.f32.mrb[15].mxu0  ;;  %873 = vmatmul.mubr.bf16.gmra.mrb[8].mxu1 %v604_v51  ;;  %v580_v61 = vmax.f32 %v520_v54, 0.0 }
 0x115   : > { %v526_v60 = vadd.f32 %v525_v59, %v1843_v10  ;;  %1445 = vmatpush3.bf16.msra.mxu1 %v1820_v2  ;;  %v581_v63 = vmax.f32 %v522_v56, 0.0 }
 0x116   : > { %v582_v62 = vmax.f32 %v524_v58, 0.0  ;;  %1438 = vmatprep.subr.bf16.mxu1 %v1826_v3 }
 0x117   : > { %v583_v0 = vmax.f32 %v526_v60, 0.0 }
 0x118   : > { %v606_v4 = vpack.c.bf16 %v582_v62, %v580_v61 }
 0x119   : > { %v607_v1 = vpack.c.bf16 %v583_v0, %v581_v63  ;;  %v529_v7 = vpop.f32.mrb[16].mxu0  ;;  %v1549_v0 = vld [vmem:[%s1992_s5 + $0x28] sm:$0xff]  }
 0x11a   : > { %v530_v11 = vadd.f32 %v529_v7, %v1839_v9  ;;  %v531_v12 = vpop.f32.mrb[17].mxu0  ;;  %1380 = vmatpush3.bf16.msra.mxu0 %v1549_v0  ;;  %1446 = vmatpush3.bf16.msra.mxu1 %v1549_v0  ;;  %v648_v7 = vld [vmem:[%s1991_s4] sm:$0x3] }
 0x11b   : > { %v532_v13 = vadd.f32 %v531_v12, %v1843_v10  ;;  %v533_v14 = vpop.f32.mrb[18].mxu0  ;;  %882 = vmatprep.mubr.bf16.mxu1 %v607_v1  ;;  %v1553_v1 = vld [vmem:[%s1992_s5 + $0x38] sm:$0xff]   ;;  %v1907_v12 = vrot.slane %v648_v7, %v323_v8 }
 0x11c   : > { %v534_v15 = vadd.f32 %v533_v14, %v1839_v9  ;;  %v535_v16 = vpop.f32.mrb[19].mxu0  ;;  %883 = vmatmul.mubr.bf16.gmra.mrb[12].mxu1 %v606_v4  ;;  %v584_v17 = vmax.f32 %v530_v11, 0.0  ;;  %v1552_v4 = vld [vmem:[%s1992_s5 + $0x78] sm:$0xff]   ;;  %v1903_v11 = vrot.slane %v648_v7, %v319_v6 }
 0x11d   : > { %v536_v2 = vadd.f32 %v535_v16, %v1843_v10  ;;  %v585_v18 = vmax.f32 %v532_v13, 0.0 }
 0x11e   : > { %v586_v3 = vmax.f32 %v534_v15, 0.0 }
 0x11f   : > { %v587_v19 = vmax.f32 %v536_v2, 0.0 }
 0x120   : > { %v608_v20 = vpack.c.bf16 %v586_v3, %v584_v17 }
 0x121   : > { %v609_v21 = vpack.c.bf16 %v587_v19, %v585_v18  ;;  %v539_v22 = vpop.f32.mrb[20].mxu0 }
 0x122   : > { %v540_v23 = vadd.f32 %v539_v22, %v1839_v9  ;;  %v541_v24 = vpop.f32.mrb[21].mxu0 }
 0x123   : > { %v542_v25 = vadd.f32 %v541_v24, %v1843_v10  ;;  %v543_v26 = vpop.f32.mrb[22].mxu0  ;;  %892 = vmatprep.mubr.bf16.mxu1 %v609_v21 }
 0x124   : > { %v544_v27 = vadd.f32 %v543_v26, %v1839_v9  ;;  %v545_v28 = vpop.f32.mrb[23].mxu0  ;;  %893 = vmatmul.mubr.bf16.gmra.mrb[16].mxu1 %v608_v20  ;;  %v588_v30 = vmax.f32 %v540_v23, 0.0 }
 0x125   : > { %v546_v29 = vadd.f32 %v545_v28, %v1843_v10  ;;  %v589_v32 = vmax.f32 %v542_v25, 0.0 }
 0x126   : > { %v590_v31 = vmax.f32 %v544_v27, 0.0 }
 0x127   : > { %v591_v33 = vmax.f32 %v546_v29, 0.0 }
 0x128   : > { %v610_v34 = vpack.c.bf16 %v590_v31, %v588_v30 }
 0x129   : > { %v611_v35 = vpack.c.bf16 %v591_v33, %v589_v32  ;;  %v549_v36 = vpop.f32.mrb[24].mxu0 }
 0x12a   : > { %v550_v37 = vadd.f32 %v549_v36, %v1839_v9  ;;  %v551_v38 = vpop.f32.mrb[25].mxu0 }
 0x12b   : > { %v552_v39 = vadd.f32 %v551_v38, %v1843_v10  ;;  %v553_v40 = vpop.f32.mrb[26].mxu0  ;;  %902 = vmatprep.mubr.bf16.mxu1 %v611_v35 }
 0x12c   : > { %v554_v41 = vadd.f32 %v553_v40, %v1839_v9  ;;  %v555_v42 = vpop.f32.mrb[27].mxu0  ;;  %903 = vmatmul.mubr.bf16.gmra.mrb[20].mxu1 %v610_v34  ;;  %v592_v44 = vmax.f32 %v550_v37, 0.0 }
 0x12d   : > { %v556_v43 = vadd.f32 %v555_v42, %v1843_v10  ;;  %v593_v46 = vmax.f32 %v552_v39, 0.0 }
 0x12e   : > { %v594_v45 = vmax.f32 %v554_v41, 0.0 }
 0x12f   : > { %v595_v47 = vmax.f32 %v556_v43, 0.0 }
 0x130   : > { %v612_v48 = vpack.c.bf16 %v594_v45, %v592_v44 }
 0x131   : > { %v613_v49 = vpack.c.bf16 %v595_v47, %v593_v46  ;;  %v559_v50 = vpop.f32.mrb[28].mxu0 }
 0x132   : > { %v560_v51 = vadd.f32 %v559_v50, %v1839_v9  ;;  %v561_v52 = vpop.f32.mrb[29].mxu0 }
 0x133   : > { %v562_v53 = vadd.f32 %v561_v52, %v1843_v10  ;;  %v563_v54 = vpop.f32.mrb[30].mxu0  ;;  %912 = vmatprep.mubr.bf16.mxu1 %v613_v49 }
 0x134   : > { %v564_v55 = vadd.f32 %v563_v54, %v1839_v9  ;;  %v565_v56 = vpop.f32.mrb[31].mxu0  ;;  %913 = vmatmul.mubr.bf16.gmra.mrb[24].mxu1 %v612_v48  ;;  %v596_v58 = vmax.f32 %v560_v51, 0.0  ;;  %v1550_v9 = vld [vmem:[%s1992_s5 + $0x70] sm:$0xff]  }
 0x135   : > { %v566_v57 = vadd.f32 %v565_v56, %v1843_v10  ;;  %v597_v60 = vmax.f32 %v562_v53, 0.0  ;;  %v1551_v10 = vld [vmem:[%s1992_s5 + $0x30] sm:$0xff]   ;;  %1381 = vmatprep.subr.bf16.mxu0 %v1550_v9  ;;  %1439 = vmatprep.subr.bf16.mxu1 %v1550_v9 }
 0x136   : > { %v598_v59 = vmax.f32 %v564_v55, 0.0  ;;  %1382 = vmatpush3.bf16.msra.mxu0 %v1551_v10  ;;  %1447 = vmatpush3.bf16.msra.mxu1 %v1551_v10 }
 0x137   : > { %v599_v61 = vmax.f32 %v566_v57, 0.0  ;;  %1383 = vmatprep.subr.bf16.mxu0 %v1552_v4  ;;  %1440 = vmatprep.subr.bf16.mxu1 %v1552_v4 }
 0x138   : > { %v614_v62 = vpack.c.bf16 %v598_v59, %v596_v58 }
 0x139   : > { %v615_v63 = vpack.c.bf16 %v599_v61, %v597_v60 }
 0x13a   : > { %1384 = vmatpush3.bf16.msra.mxu0 %v1553_v1  ;;  %1448 = vmatpush3.bf16.msra.mxu1 %v1553_v1 }
 0x13b   : > { %922 = vmatprep.mubr.bf16.mxu1 %v615_v63 }
 0x13c   : > { %923 = vmatmul.mubr.bf16.gmra.mrb[28].mxu1 %v614_v62 }
 0x1d7   : > { %v854_v13 = vpop.f32.mrb[0].mxu1 }
 0x1d8   : > { %v855_v14 = vadd.f32 %v854_v13, %v1903_v11  ;;  %v856_v15 = vpop.f32.mrb[1].mxu1 }
 0x1d9   : > { %v857_v16 = vadd.f32 %v856_v15, %v1907_v12  ;;  %v858_v2 = vpop.f32.mrb[2].mxu1 }
 0x1da   : > { %v859_v17 = vadd.f32 %v858_v2, %v1903_v11  ;;  %v860_v3 = vpop.f32.mrb[3].mxu1  ;;  %v933_v19 = vmax.f32 %v855_v14, 0.0 }
 0x1db   : > { %v861_v18 = vadd.f32 %v860_v3, %v1907_v12  ;;  %v934_v6 = vmax.f32 %v857_v16, 0.0 }
 0x1dc   : > { %v935_v20 = vmax.f32 %v859_v17, 0.0 }
 0x1dd   : > { %v936_v21 = vmax.f32 %v861_v18, 0.0 }
 0x1de   : > { %v965_v22 = vpack.c.bf16 %v935_v20, %v933_v19 }
 0x1df   : > { %v966_v5 = vpack.c.bf16 %v936_v21, %v934_v6  ;;  %v864_v8 = vpop.f32.mrb[4].mxu1 }
 0x1e0   : > { %v865_v23 = vadd.f32 %v864_v8, %v1903_v11  ;;  %v866_v24 = vpop.f32.mrb[5].mxu1 }
 0x1e1   : > { %v867_v25 = vadd.f32 %v866_v24, %v1907_v12  ;;  %v868_v26 = vpop.f32.mrb[6].mxu1  ;;  %1148 = vmatprep.mubr.bf16.mxu0 %v966_v5 }
 0x1e2   : > { %v869_v27 = vadd.f32 %v868_v26, %v1903_v11  ;;  %v870_v28 = vpop.f32.mrb[7].mxu1  ;;  %1149 = vmatmul.mubr.bf16.vlgmr.msra.gmra.mrb[32].mxu0 %v965_v22  ;;  %v937_v30 = vmax.f32 %v865_v23, 0.0 }
 0x1e3   : > { %v871_v29 = vadd.f32 %v870_v28, %v1907_v12  ;;  %v938_v32 = vmax.f32 %v867_v25, 0.0 }
 0x1e4   : > { %v939_v31 = vmax.f32 %v869_v27, 0.0 }
 0x1e5   : > { %v940_v33 = vmax.f32 %v871_v29, 0.0 }
 0x1e6   : > { %v967_v34 = vpack.c.bf16 %v939_v31, %v937_v30 }
 0x1e7   : > { %v968_v35 = vpack.c.bf16 %v940_v33, %v938_v32  ;;  %v874_v36 = vpop.f32.mrb[8].mxu1 }
 0x1e8   : > { %v875_v37 = vadd.f32 %v874_v36, %v1903_v11  ;;  %v876_v38 = vpop.f32.mrb[9].mxu1 }
 0x1e9   : > { %v877_v39 = vadd.f32 %v876_v38, %v1907_v12  ;;  %v878_v40 = vpop.f32.mrb[10].mxu1  ;;  %1156 = vmatprep.mubr.bf16.mxu0 %v968_v35 }
 0x1ea   : > { %v879_v41 = vadd.f32 %v878_v40, %v1903_v11  ;;  %v880_v42 = vpop.f32.mrb[11].mxu1  ;;  %1157 = vmatmul.mubr.bf16.gmra.mrb[36].mxu0 %v967_v34  ;;  %v941_v44 = vmax.f32 %v875_v37, 0.0 }
 0x1eb   : > { %v881_v43 = vadd.f32 %v880_v42, %v1907_v12  ;;  %v942_v46 = vmax.f32 %v877_v39, 0.0 }
 0x1ec   : > { %v943_v45 = vmax.f32 %v879_v41, 0.0 }
 0x1ed   : > { %v944_v47 = vmax.f32 %v881_v43, 0.0 }
 0x1ee   : > { %v969_v48 = vpack.c.bf16 %v943_v45, %v941_v44 }
 0x1ef   : > { %v970_v49 = vpack.c.bf16 %v944_v47, %v942_v46  ;;  %v884_v50 = vpop.f32.mrb[12].mxu1 }
 0x1f0   : > { %v885_v51 = vadd.f32 %v884_v50, %v1903_v11  ;;  %v886_v52 = vpop.f32.mrb[13].mxu1 }
 0x1f1   : > { %v887_v53 = vadd.f32 %v886_v52, %v1907_v12  ;;  %v888_v54 = vpop.f32.mrb[14].mxu1  ;;  %1164 = vmatprep.mubr.bf16.mxu0 %v970_v49 }
 0x1f2   : > { %v889_v55 = vadd.f32 %v888_v54, %v1903_v11  ;;  %v890_v56 = vpop.f32.mrb[15].mxu1  ;;  %1165 = vmatmul.mubr.bf16.gmra.mrb[40].mxu0 %v969_v48  ;;  %v945_v58 = vmax.f32 %v885_v51, 0.0 }
 0x1f3   : > { %v891_v57 = vadd.f32 %v890_v56, %v1907_v12  ;;  %v946_v60 = vmax.f32 %v887_v53, 0.0 }
 0x1f4   : > { %v947_v59 = vmax.f32 %v889_v55, 0.0 }
 0x1f5   : > { %v948_v61 = vmax.f32 %v891_v57, 0.0 }
 0x1f6   : > { %v971_v62 = vpack.c.bf16 %v947_v59, %v945_v58  ;;  %v1945_v59 = vld [vmem:[%s1993_s6] ss:$0 sm:$0xff] }
 0x1f7   : > { %v972_v63 = vpack.c.bf16 %v948_v61, %v946_v60  ;;  %v894_v0 = vpop.f32.mrb[16].mxu1 }
 0x1f8   : > { %v895_v9 = vadd.f32 %v894_v0, %v1903_v11  ;;  %v896_v10 = vpop.f32.mrb[17].mxu1 }
 0x1f9   : > { %v897_v4 = vadd.f32 %v896_v10, %v1907_v12  ;;  %v898_v1 = vpop.f32.mrb[18].mxu1  ;;  %1172 = vmatprep.mubr.bf16.mxu0 %v972_v63 }
 0x1fa   : > { %v899_v7 = vadd.f32 %v898_v1, %v1903_v11  ;;  %v900_v13 = vpop.f32.mrb[19].mxu1  ;;  %1173 = vmatmul.mubr.bf16.gmra.mrb[44].mxu0 %v971_v62  ;;  %v949_v15 = vmax.f32 %v895_v9, 0.0 }
 0x1fb   : > { %v901_v14 = vadd.f32 %v900_v13, %v1907_v12  ;;  %v950_v2 = vmax.f32 %v897_v4, 0.0 }
 0x1fc   : > { %v951_v16 = vmax.f32 %v899_v7, 0.0 }
 0x1fd   : > { %v952_v17 = vmax.f32 %v901_v14, 0.0 }
 0x1fe   : > { %v973_v3 = vpack.c.bf16 %v951_v16, %v949_v15 }
 0x1ff   : > { %v974_v18 = vpack.c.bf16 %v952_v17, %v950_v2  ;;  %v904_v19 = vpop.f32.mrb[20].mxu1 }
 0x200   : > { %v905_v20 = vadd.f32 %v904_v19, %v1903_v11  ;;  %v906_v6 = vpop.f32.mrb[21].mxu1 }
 0x201   : > { %v907_v21 = vadd.f32 %v906_v6, %v1907_v12  ;;  %v908_v22 = vpop.f32.mrb[22].mxu1  ;;  %1180 = vmatprep.mubr.bf16.mxu0 %v974_v18 }
 0x202   : > { %v909_v5 = vadd.f32 %v908_v22, %v1903_v11  ;;  %v910_v8 = vpop.f32.mrb[23].mxu1  ;;  %1181 = vmatmul.mubr.bf16.gmra.mrb[48].mxu0 %v973_v3  ;;  %v953_v24 = vmax.f32 %v905_v20, 0.0 }
 0x203   : > { %v911_v23 = vadd.f32 %v910_v8, %v1907_v12  ;;  %v954_v26 = vmax.f32 %v907_v21, 0.0 }
 0x204   : > { %v955_v25 = vmax.f32 %v909_v5, 0.0 }
 0x205   : > { %v956_v27 = vmax.f32 %v911_v23, 0.0 }
 0x206   : > { %v975_v28 = vpack.c.bf16 %v955_v25, %v953_v24 }
 0x207   : > { %v976_v29 = vpack.c.bf16 %v956_v27, %v954_v26  ;;  %v914_v30 = vpop.f32.mrb[24].mxu1 }
 0x208   : > { %v915_v31 = vadd.f32 %v914_v30, %v1903_v11  ;;  %v916_v32 = vpop.f32.mrb[25].mxu1 }
 0x209   : > { %v917_v33 = vadd.f32 %v916_v32, %v1907_v12  ;;  %v918_v34 = vpop.f32.mrb[26].mxu1  ;;  %1188 = vmatprep.mubr.bf16.mxu0 %v976_v29 }
 0x20a   : > { %v919_v35 = vadd.f32 %v918_v34, %v1903_v11  ;;  %v920_v36 = vpop.f32.mrb[27].mxu1  ;;  %1189 = vmatmul.mubr.bf16.gmra.mrb[52].mxu0 %v975_v28  ;;  %v957_v38 = vmax.f32 %v915_v31, 0.0 }
 0x20b   : > { %v921_v37 = vadd.f32 %v920_v36, %v1907_v12  ;;  %v958_v40 = vmax.f32 %v917_v33, 0.0 }
 0x20c   : > { %v959_v39 = vmax.f32 %v919_v35, 0.0 }
 0x20d   : > { %v960_v41 = vmax.f32 %v921_v37, 0.0 }
 0x20e   : > { %v977_v42 = vpack.c.bf16 %v959_v39, %v957_v38 }
 0x20f   : > { %v978_v43 = vpack.c.bf16 %v960_v41, %v958_v40  ;;  %v924_v44 = vpop.f32.mrb[28].mxu1 }
 0x210   : > { %v925_v45 = vadd.f32 %v924_v44, %v1903_v11  ;;  %v926_v46 = vpop.f32.mrb[29].mxu1 }
 0x211   : > { %v927_v47 = vadd.f32 %v926_v46, %v1907_v12  ;;  %v928_v48 = vpop.f32.mrb[30].mxu1  ;;  %1196 = vmatprep.mubr.bf16.mxu1 %v978_v43 }
 0x212   : > { %v929_v49 = vadd.f32 %v928_v48, %v1903_v11  ;;  %v930_v50 = vpop.f32.mrb[31].mxu1  ;;  %1197 = vmatmul.mubr.bf16.vlgmr.msra.gmra.mrb[32].mxu1 %v977_v42  ;;  %v961_v52 = vmax.f32 %v925_v45, 0.0 }
 0x213   : > { %v931_v51 = vadd.f32 %v930_v50, %v1907_v12  ;;  %v962_v54 = vmax.f32 %v927_v47, 0.0 }
 0x214   : > { %v963_v53 = vmax.f32 %v929_v49, 0.0 }
 0x215   : > { %v964_v55 = vmax.f32 %v931_v51, 0.0 }
 0x216   : > { %v979_v56 = vpack.c.bf16 %v963_v53, %v961_v52 }
 0x217   : > { %v980_v57 = vpack.c.bf16 %v964_v55, %v962_v54 }
 0x219   : > { %1204 = vmatprep.mubr.bf16.mxu1 %v980_v57 }
 0x21a   : > { %1205 = vmatmul.mubr.bf16.gmra.mrb[36].mxu1 %v979_v56 }
 0x2b5   : > { %v1385_v58 = vpop.f32.mrb[32].mxu0 }
 0x2b6   : > { %v1386_v11 = vpop.f32.mrb[33].mxu0 }
 0x2b7   : > { %v1387_v60 = vadd.f32 %v1386_v11, %v1385_v58  ;;  %v1388_v61 = vpop.f32.mrb[34].mxu0 }
 0x2b8   : > { %v1389_v12 = vpop.f32.mrb[35].mxu0 }
 0x2b9   : > { %v1151_v62 = vadd.f32 %v1387_v60, %v1945_v59  ;;  %v1390_v63 = vadd.f32 %v1389_v12, %v1388_v61 }
 0x2bb   : > { %1213 = vst [vmem:[%s1950_s22] sm:$0xff] %v1151_v62  ;;  %v1154_v0 = vadd.f32 %v1390_v63, %v1945_v59 }
 0x2bd   : > { %1214 = vst [vmem:[%s1950_s22 + $0x8] sm:$0xff] %v1154_v0  ;;  %v1391_v9 = vpop.f32.mrb[36].mxu0 }
 0x2be   : > { %v1392_v10 = vpop.f32.mrb[37].mxu0 }
 0x2bf   : > { %v1393_v4 = vadd.f32 %v1392_v10, %v1391_v9  ;;  %v1394_v1 = vpop.f32.mrb[38].mxu0 }
 0x2c0   : > { %v1395_v7 = vpop.f32.mrb[39].mxu0 }
 0x2c1   : > { %v1159_v13 = vadd.f32 %v1393_v4, %v1945_v59  ;;  %v1396_v14 = vadd.f32 %v1395_v7, %v1394_v1 }
 0x2c3   : > { %1215 = vst [vmem:[%s1950_s22 + $0x10] sm:$0xff] %v1159_v13  ;;  %v1162_v15 = vadd.f32 %v1396_v14, %v1945_v59 }
 0x2c5   : > { %1216 = vst [vmem:[%s1950_s22 + $0x18] sm:$0xff] %v1162_v15  ;;  %v1397_v16 = vpop.f32.mrb[40].mxu0 }
 0x2c6   : > { %v1398_v2 = vpop.f32.mrb[41].mxu0 }
 0x2c7   : > { %v1399_v17 = vadd.f32 %v1398_v2, %v1397_v16  ;;  %v1400_v3 = vpop.f32.mrb[42].mxu0 }
 0x2c8   : > { %v1401_v18 = vpop.f32.mrb[43].mxu0 }
 0x2c9   : > { %v1167_v19 = vadd.f32 %v1399_v17, %v1945_v59  ;;  %v1402_v20 = vadd.f32 %v1401_v18, %v1400_v3 }
 0x2cb   : > { %1217 = vst [vmem:[%s1950_s22 + $0x20] sm:$0xff] %v1167_v19  ;;  %v1170_v6 = vadd.f32 %v1402_v20, %v1945_v59 }
 0x2cd   : > { %1218 = vst [vmem:[%s1950_s22 + $0x28] sm:$0xff] %v1170_v6  ;;  %v1403_v21 = vpop.f32.mrb[44].mxu0 }
 0x2ce   : > { %v1404_v22 = vpop.f32.mrb[45].mxu0 }
 0x2cf   : > { %v1405_v5 = vadd.f32 %v1404_v22, %v1403_v21  ;;  %v1406_v8 = vpop.f32.mrb[46].mxu0 }
 0x2d0   : > { %v1407_v23 = vpop.f32.mrb[47].mxu0 }
 0x2d1   : > { %v1175_v24 = vadd.f32 %v1405_v5, %v1945_v59  ;;  %v1408_v25 = vadd.f32 %v1407_v23, %v1406_v8 }
 0x2d3   : > { %1219 = vst [vmem:[%s1950_s22 + $0x30] sm:$0xff] %v1175_v24  ;;  %v1178_v26 = vadd.f32 %v1408_v25, %v1945_v59 }
 0x2d5   : > { %1220 = vst [vmem:[%s1950_s22 + $0x38] sm:$0xff] %v1178_v26  ;;  %v1409_v27 = vpop.f32.mrb[48].mxu0 }
 0x2d6   : > { %v1410_v28 = vpop.f32.mrb[49].mxu0 }
 0x2d7   : > { %v1411_v29 = vadd.f32 %v1410_v28, %v1409_v27  ;;  %v1412_v30 = vpop.f32.mrb[50].mxu0 }
 0x2d8   : > { %v1413_v31 = vpop.f32.mrb[51].mxu0 }
 0x2d9   : > { %v1183_v32 = vadd.f32 %v1411_v29, %v1945_v59  ;;  %v1414_v33 = vadd.f32 %v1413_v31, %v1412_v30 }
 0x2db   : > { %1221 = vst [vmem:[%s1950_s22 + $0x40] sm:$0xff] %v1183_v32  ;;  %v1186_v34 = vadd.f32 %v1414_v33, %v1945_v59 }
 0x2dd   : > { %1222 = vst [vmem:[%s1950_s22 + $0x48] sm:$0xff] %v1186_v34  ;;  %v1415_v35 = vpop.f32.mrb[52].mxu0 }
 0x2de   : > { %v1416_v36 = vpop.f32.mrb[53].mxu0 }
 0x2df   : > { %v1417_v37 = vadd.f32 %v1416_v36, %v1415_v35  ;;  %v1418_v38 = vpop.f32.mrb[54].mxu0 }
 0x2e0   : > { %v1419_v39 = vpop.f32.mrb[55].mxu0 }
 0x2e1   : > { %v1191_v40 = vadd.f32 %v1417_v37, %v1945_v59  ;;  %v1420_v41 = vadd.f32 %v1419_v39, %v1418_v38 }
 0x2e3   : > { %1223 = vst [vmem:[%s1950_s22 + $0x50] sm:$0xff] %v1191_v40  ;;  %v1194_v42 = vadd.f32 %v1420_v41, %v1945_v59 }
 0x2e5   : > { %1224 = vst [vmem:[%s1950_s22 + $0x58] sm:$0xff] %v1194_v42  ;;  %v1421_v43 = vpop.f32.mrb[32].mxu1 }
 0x2e6   : > { %v1422_v44 = vpop.f32.mrb[33].mxu1 }
 0x2e7   : > { %v1423_v45 = vadd.f32 %v1422_v44, %v1421_v43  ;;  %v1424_v46 = vpop.f32.mrb[34].mxu1 }
 0x2e8   : > { %v1425_v47 = vpop.f32.mrb[35].mxu1 }
 0x2e9   : > { %v1199_v48 = vadd.f32 %v1423_v45, %v1945_v59  ;;  %v1426_v49 = vadd.f32 %v1425_v47, %v1424_v46 }
 0x2eb   : > { %1225 = vst [vmem:[%s1950_s22 + $0x60] sm:$0xff] %v1199_v48  ;;  %v1202_v50 = vadd.f32 %v1426_v49, %v1945_v59 }
 0x2ed   : > { %1226 = vst [vmem:[%s1950_s22 + $0x68] sm:$0xff] %v1202_v50  ;;  %v1427_v51 = vpop.f32.mrb[36].mxu1 }
 0x2ee   : > { %v1428_v52 = vpop.f32.mrb[37].mxu1 }
 0x2ef   : > { %v1429_v53 = vadd.f32 %v1428_v52, %v1427_v51  ;;  %v1430_v54 = vpop.f32.mrb[38].mxu1 }
 0x2f0   : > { %v1431_v55 = vpop.f32.mrb[39].mxu1 }
 0x2f1   : > { %v1207_v56 = vadd.f32 %v1429_v53, %v1945_v59  ;;  %v1432_v57 = vadd.f32 %v1431_v55, %v1430_v54 }
 0x2f3   : > { %1227 = vst [vmem:[%s1950_s22 + $0x70] sm:$0xff] %v1207_v56  ;;  %v1210_v58 = vadd.f32 %v1432_v57, %v1945_v59 }
 0x2f5   : > { %1228 = vst [vmem:[%s1950_s22 + $0x78] sm:$0xff] %v1210_v58 }
 0x2f6 PF: > { %s17_s24 = sadd.s32 1, %s1560_s24  }
 0x2f7   : > { %p14_p4 = scmp.ge.s32.totalorder %s17_s24, 4  }
 0x2f9   :  { %16 = sbr.rel (!%p14_p4) target bundleno = 1 (0x1), region = 78 }

</bundles_post_ra>
